<compile_context>
chip_gen: v7x
topology: tpu7x:2x2x1
jax: 0.10.0
libtpu: 0.0.40
codegen_flags: <defaults>
</compile_context>

<pallas_src>
import math

import jax
import jax.numpy as jnp
import numpy as np
from jax.experimental import pallas as pl
from jax.experimental.pallas import tpu as pltpu

_SELU_ALPHA = 1.6732632423543772
_SELU_SCALE = 1.0507009873554805
_INV_SQRT_512 = 1.0 / math.sqrt(512.0)   # hard-coded in the PyTorch source
                                         # (NOT 1/sqrt(H) -- kept for parity)


def _selu(x):
    return _SELU_SCALE * jnp.where(x > 0, x, _SELU_ALPHA * (jnp.exp(x) - 1.0))


def _softmax_last(x):
    m = jnp.max(x, axis=-1, keepdims=True)
    e = jnp.exp(x - m)
    # reciprocal on the EUP + multiply instead of a per-element divide.
    return e * pl.reciprocal(jnp.sum(e, axis=-1, keepdims=True), approx=True)


def _bf16(x):
    return x.astype(jnp.bfloat16)


# ----------------------------------------------------------------------------
# Kernel 1: selfatt=False branch
#   gamma_h = linear_in(h)                       (B, H)
#   weights = softmax(bmm(ctx, gamma_h))         (B, S)
#   c_t     = bmm(weights, ctx)                  (B, H)
#   output  = linear_out(cat([h, c_t], -1))      (B, H)
# Weights arrive pre-transposed (in, out) and in bf16.
# ----------------------------------------------------------------------------
def _attn_kernel(h_ref, ctx_ref,
                 wi1_ref, bi1_ref, wi2_ref, bi2_ref,
                 wo1h_ref, wo1c_ref, bo1_ref, wo2_ref, bo2_ref,
                 out_ref, wts_ref):
    h = h_ref[...]                     # (B, H) f32
    ctx = ctx_ref[...]                 # (B, S, H) f32
    B, S, H = ctx.shape

    h_bf = _bf16(h)
    ctx_bf = _bf16(ctx)

    # linear_in: Linear -> SELU -> (Dropout=id) -> Linear -> SELU -> (Dropout=id)
    gh = _selu(jnp.dot(h_bf, wi1_ref[...],
                       preferred_element_type=jnp.float32) + bi1_ref[...])
    gh = _selu(jnp.dot(_bf16(gh), wi2_ref[...],
                       preferred_element_type=jnp.float32) + bi2_ref[...])

    # weights = softmax(bmm(context, gamma_h))  -> MXU batched matmul (q = 1)
    gh3 = _bf16(gh)[:, None, :]                                        # (B, 1, H)
    scores = jnp.einsum('bqh,bkh->bqk', gh3, ctx_bf,
                        preferred_element_type=jnp.float32)            # (B, 1, S)
    w3 = _softmax_last(scores)                                         # (B, 1, S)

    # c_t = bmm(weights, context)  -> MXU batched matmul
    c_t3 = jnp.einsum('bqk,bkh->bqh', _bf16(w3), ctx_bf,
                      preferred_element_type=jnp.float32)              # (B, 1, H)
    c_t = c_t3.reshape(B, H)

    # linear_out on concat([h, c_t]); first-layer weight split into halves so
    # no in-kernel concatenation is needed.
    o = _selu(jnp.dot(h_bf, wo1h_ref[...], preferred_element_type=jnp.float32)
              + jnp.dot(_bf16(c_t), wo1c_ref[...],
                        preferred_element_type=jnp.float32)
              + bo1_ref[...])
    o = _selu(jnp.dot(_bf16(o), wo2_ref[...],
                      preferred_element_type=jnp.float32) + bo2_ref[...])

    out_ref[...] = o
    wts_ref[...] = w3.reshape(B, S)


# ----------------------------------------------------------------------------
# Kernel 2: selfatt=True branch, one batch element per grid step.
#   gamma_enc = linear_enc(ctx)                              (S, H)
#   weights   = softmax(ge @ ge^T / sqrt(512))               (S, S)
#   c_t       = weights @ ge                                 (S, H)
#   output    = linear_out(cat([ge, c_t], -1)) + ctx         (S, H)
# ----------------------------------------------------------------------------
def _selfatt_kernel(ctx_ref,
                    we1_ref, be1_ref, we2_ref, be2_ref,
                    wo1g_ref, wo1c_ref, bo1_ref, wo2_ref, bo2_ref,
                    out_ref, wts_ref):
    ctx = ctx_ref[...]                 # (S, H) f32, one batch element
    ctx_bf = _bf16(ctx)

    # linear_enc (two Linear+SELU layers) as plain 2-D MXU matmuls.
    ge = _selu(jnp.dot(ctx_bf, we1_ref[...],
                       preferred_element_type=jnp.float32) + be1_ref[...])
    ge = _selu(jnp.dot(_bf16(ge), we2_ref[...],
                       preferred_element_type=jnp.float32) + be2_ref[...])

    ge_bf = _bf16(ge)                           # keys / values / linear_out input
    geq_bf = _bf16(ge * _INV_SQRT_512)          # scale folded into the query side

    # scaled dot-product self attention (hard-coded sqrt(512) as in torch code)
    scores = jnp.einsum('qh,kh->qk', geq_bf, ge_bf,
                        preferred_element_type=jnp.float32)            # (S, S)
    w = _softmax_last(scores)
    c_t = jnp.dot(_bf16(w), ge_bf, preferred_element_type=jnp.float32)  # (S, H)

    # linear_out on concat([gamma_enc, c_t]); first-layer weight split in halves.
    o = _selu(jnp.dot(ge_bf, wo1g_ref[...], preferred_element_type=jnp.float32)
              + jnp.dot(_bf16(c_t), wo1c_ref[...],
                        preferred_element_type=jnp.float32)
              + bo1_ref[...])
    o = _selu(jnp.dot(_bf16(o), wo2_ref[...],
                      preferred_element_type=jnp.float32) + bo2_ref[...])

    out_ref[...] = o + ctx             # residual add of self.context
    wts_ref[...] = w


# ----------------------------------------------------------------------------
# Wrappers: pre-transpose / bf16-cast the weights, build grid + BlockSpecs.
# ----------------------------------------------------------------------------
def _full_spec(shape):
    nd = len(shape)
    return pl.BlockSpec(shape, lambda i, _nd=nd: (0,) * _nd)


def luong_attention_step(h, ctx_bsh, params):
    """selfatt=False branch.  h: (B,H), ctx_bsh: (B,S,H)."""
    B, H = h.shape
    S = ctx_bsh.shape[1]
    wi1, bi1, wi2, bi2 = params['in']
    wo1, bo1, wo2, bo2 = params['out']

    # Pre-transpose to (in, out) and cast to bf16 outside the kernel.
    wi1t, wi2t = _bf16(wi1.T), _bf16(wi2.T)
    wo1ht, wo1ct = _bf16(wo1[:, :H].T), _bf16(wo1[:, H:].T)
    wo2t = _bf16(wo2.T)

    inputs = (h, ctx_bsh, wi1t, bi1, wi2t, bi2, wo1ht, wo1ct, bo1, wo2t, bo2)
    out, wts = pl.pallas_call(
        _attn_kernel,
        grid=(1,),
        in_specs=[_full_spec(x.shape) for x in inputs],
        out_specs=(_full_spec((B, H)), _full_spec((B, S))),
        out_shape=(jax.ShapeDtypeStruct((B, H), jnp.float32),
                   jax.ShapeDtypeStruct((B, S), jnp.float32)),
    )(*inputs)
    return out, wts


def luong_self_attention(ctx_bsh, params):
    """selfatt=True branch.  ctx_bsh: (B,S,H).  Returns ((S,B,H), (B,S,S))."""
    B, S, H = ctx_bsh.shape
    we1, be1, we2, be2 = params['enc']
    wo1, bo1, wo2, bo2 = params['out']

    we1t, we2t = _bf16(we1.T), _bf16(we2.T)
    wo1gt, wo1ct = _bf16(wo1[:, :H].T), _bf16(wo1[:, H:].T)
    wo2t = _bf16(wo2.T)

    def _const(shape):
        nd = len(shape)
        return pl.BlockSpec(shape, lambda b, _nd=nd: (0,) * _nd)

    in_specs = [
        pl.BlockSpec((None, S, H), lambda b: (b, 0, 0)),   # ctx: one batch row
        _const(we1t.shape), _const(be1.shape),
        _const(we2t.shape), _const(be2.shape),
        _const(wo1gt.shape), _const(wo1ct.shape), _const(bo1.shape),
        _const(wo2t.shape), _const(bo2.shape),
    ]
    out_specs = (pl.BlockSpec((None, S, H), lambda b: (b, 0, 0)),
                 pl.BlockSpec((None, S, S), lambda b: (b, 0, 0)))

    out, wts = pl.pallas_call(
        _selfatt_kernel,
        grid=(B,),
        in_specs=in_specs,
        out_specs=out_specs,
        out_shape=(jax.ShapeDtypeStruct((B, S, H), jnp.float32),
                   jax.ShapeDtypeStruct((B, S, S), jnp.float32)),
        compiler_params=pltpu.CompilerParams(
            dimension_semantics=("parallel",)),
    )(ctx_bsh, we1t, be1, we2t, be2, wo1gt, wo1ct, bo1, wo2t, bo2)

    # output = output.transpose(0, 1): (B,S,H) -> (S,B,H), done in glue.
    return jnp.transpose(out, (1, 0, 2)), wts


# ----------------------------------------------------------------------------
# Deterministic parameter init (matches nn.Linear shapes: weight (out,in), bias (out,))
# ----------------------------------------------------------------------------
def _init_linear(key, out_dim, in_dim):
    kw, kb = jax.random.split(key)
    bound = 1.0 / math.sqrt(in_dim)
    w = jax.random.uniform(kw, (out_dim, in_dim), jnp.float32, -bound, bound)
    b = jax.random.uniform(kb, (1, out_dim), jnp.float32, -bound, bound)
    return w, b


def init_params(key, hidden):
    ks = jax.random.split(key, 6)
    wi1, bi1 = _init_linear(ks[0], hidden, hidden)       # linear_in[0]
    wi2, bi2 = _init_linear(ks[1], hidden, hidden)       # linear_in[3]
    we1, be1 = _init_linear(ks[2], hidden, hidden)       # linear_enc[0]
    we2, be2 = _init_linear(ks[3], hidden, hidden)       # linear_enc[3]
    wo1, bo1 = _init_linear(ks[4], hidden, 2 * hidden)   # linear_out[0]
    wo2, bo2 = _init_linear(ks[5], hidden, hidden)       # linear_out[3]
    return {'in': (wi1, bi1, wi2, bi2),
            'enc': (we1, be1, we2, be2),
            'out': (wo1, bo1, wo2, bo2)}


# ----------------------------------------------------------------------------
# Pure-JAX reference (mirrors the PyTorch forward, eval mode) at the same
# matmul precision (bf16 operands, f32 accumulation) as the kernels.
# ----------------------------------------------------------------------------
def _mm(x, w):
    return jnp.dot(_bf16(x), _bf16(w), preferred_element_type=jnp.float32)


def _ref_step(h, ctx, params):
    wi1, bi1, wi2, bi2 = params['in']
    wo1, bo1, wo2, bo2 = params['out']
    gh = _selu(_mm(h, wi1.T) + bi1)
    gh = _selu(_mm(gh, wi2.T) + bi2)
    scores = jnp.einsum('bsh,bh->bs', _bf16(ctx), _bf16(gh),
                        preferred_element_type=jnp.float32)
    w = jax.nn.softmax(scores, axis=-1)
    c_t = jnp.einsum('bs,bsh->bh', _bf16(w), _bf16(ctx),
                     preferred_element_type=jnp.float32)
    cat = jnp.concatenate([h, c_t], axis=1)
    o = _selu(_mm(cat, wo1.T) + bo1)
    o = _selu(_mm(o, wo2.T) + bo2)
    return o, w


def _ref_self(ctx, params):
    we1, be1, we2, be2 = params['enc']
    wo1, bo1, wo2, bo2 = params['out']
    ge = _selu(_mm(ctx, we1.T) + be1)
    ge = _selu(_mm(ge, we2.T) + be2)
    scores = jnp.einsum('bqh,bkh->bqk', _bf16(ge), _bf16(ge),
                        preferred_element_type=jnp.float32)
    w = jax.nn.softmax(scores / math.sqrt(512.0), axis=-1)
    c_t = jnp.einsum('bqk,bkh->bqh', _bf16(w), _bf16(ge),
                     preferred_element_type=jnp.float32)
    cat = jnp.concatenate([ge, c_t], axis=-1)
    o = _selu(_mm(cat, wo1.T) + bo1)
    o = _selu(_mm(o, wo2.T) + bo2) + ctx
    return jnp.transpose(o, (1, 0, 2)), w


if __name__ == "__main__":
    B, S, H = 2, 8, 32   # batch, source seq len, hidden_size (emb_size unused in forward)

    key = jax.random.PRNGKey(0)
    k_ctx, k_h, k_p = jax.random.split(key, 3)

    # context as given to init_context: (seq, batch, hidden)
    context = jax.random.normal(k_ctx, (S, B, H), jnp.float32)
    h = jax.random.normal(k_h, (B, H), jnp.float32)
    params = init_params(k_p, H)

    # init_context: self.context = context.transpose(0, 1) -> (B, S, H)
    ctx_bsh = jnp.transpose(context, (1, 0, 2))

    # selfatt=False branch
    out1, w1 = luong_attention_step(h, ctx_bsh, params)
    # selfatt=True branch
    out2, w2 = luong_self_attention(ctx_bsh, params)
    jax.block_until_ready((out1, w1, out2, w2))

    # verify against the reference (silent on success)
    r_out1, r_w1 = _ref_step(h, ctx_bsh, params)
    r_out2, r_w2 = _ref_self(ctx_bsh, params)
    tol = dict(rtol=2e-2, atol=2e-2)
    assert np.allclose(np.asarray(out1), np.asarray(r_out1), **tol)
    assert np.allclose(np.asarray(w1), np.asarray(r_w1), **tol)
    assert np.allclose(np.asarray(out2), np.asarray(r_out2), **tol)
    assert np.allclose(np.asarray(w2), np.asarray(r_w2), **tol)

    print("KERNEL_OK")
</pallas_src>

<mosaic_0001>
module attributes {stable_mosaic.version = 11 : i64} {
  func.func @_attn_kernel(%arg0: i32, %arg1: memref<2x32xf32, #tpu.memory_space<vmem>>, %arg2: memref<2x8x32xf32, #tpu.memory_space<vmem>>, %arg3: memref<32x32xbf16, #tpu.memory_space<vmem>>, %arg4: memref<1x32xf32, #tpu.memory_space<vmem>>, %arg5: memref<32x32xbf16, #tpu.memory_space<vmem>>, %arg6: memref<1x32xf32, #tpu.memory_space<vmem>>, %arg7: memref<32x32xbf16, #tpu.memory_space<vmem>>, %arg8: memref<32x32xbf16, #tpu.memory_space<vmem>>, %arg9: memref<1x32xf32, #tpu.memory_space<vmem>>, %arg10: memref<32x32xbf16, #tpu.memory_space<vmem>>, %arg11: memref<1x32xf32, #tpu.memory_space<vmem>>, %arg12: memref<2x32xf32, #tpu.memory_space<vmem>>, %arg13: memref<2x8xf32, #tpu.memory_space<vmem>>) attributes {dimension_semantics = [#tpu.dimension_semantics<arbitrary>], iteration_bounds = array<i64: 1>, scalar_prefetch = 0 : i64, scratch_operands = 0 : i64, tpu.core_type = #tpu.core_type<tc>, window_params = [{pipeline_mode = #tpu.pipeline_mode<synchronous>, transform_indices = @transform_0, window_bounds = array<i64: 2, 32>}, {pipeline_mode = #tpu.pipeline_mode<synchronous>, transform_indices = @transform_1, window_bounds = array<i64: 2, 8, 32>}, {pipeline_mode = #tpu.pipeline_mode<synchronous>, transform_indices = @transform_2, window_bounds = array<i64: 32, 32>}, {pipeline_mode = #tpu.pipeline_mode<synchronous>, transform_indices = @transform_3, window_bounds = array<i64: 1, 32>}, {pipeline_mode = #tpu.pipeline_mode<synchronous>, transform_indices = @transform_4, window_bounds = array<i64: 32, 32>}, {pipeline_mode = #tpu.pipeline_mode<synchronous>, transform_indices = @transform_5, window_bounds = array<i64: 1, 32>}, {pipeline_mode = #tpu.pipeline_mode<synchronous>, transform_indices = @transform_6, window_bounds = array<i64: 32, 32>}, {pipeline_mode = #tpu.pipeline_mode<synchronous>, transform_indices = @transform_7, window_bounds = array<i64: 32, 32>}, {pipeline_mode = #tpu.pipeline_mode<synchronous>, transform_indices = @transform_8, window_bounds = array<i64: 1, 32>}, {pipeline_mode = #tpu.pipeline_mode<synchronous>, transform_indices = @transform_9, window_bounds = array<i64: 32, 32>}, {pipeline_mode = #tpu.pipeline_mode<synchronous>, transform_indices = @transform_10, window_bounds = array<i64: 1, 32>}, {pipeline_mode = #tpu.pipeline_mode<synchronous>, transform_indices = @transform_11, window_bounds = array<i64: 2, 32>}, {pipeline_mode = #tpu.pipeline_mode<synchronous>, transform_indices = @transform_12, window_bounds = array<i64: 2, 8>}]} {
    %c0 = arith.constant 0 : index
    %c0_0 = arith.constant 0 : index
    %0 = vector.load %arg1[%c0, %c0_0] : memref<2x32xf32, #tpu.memory_space<vmem>>, vector<2x32xf32>
    %c0_1 = arith.constant 0 : index
    %c0_2 = arith.constant 0 : index
    %c0_3 = arith.constant 0 : index
    %1 = vector.load %arg2[%c0_1, %c0_2, %c0_3] : memref<2x8x32xf32, #tpu.memory_space<vmem>>, vector<2x8x32xf32>
    %2 = arith.truncf %0 : vector<2x32xf32> to vector<2x32xbf16>
    %3 = arith.truncf %1 : vector<2x8x32xf32> to vector<2x8x32xbf16>
    %c0_4 = arith.constant 0 : index
    %c0_5 = arith.constant 0 : index
    %4 = vector.load %arg3[%c0_4, %c0_5] : memref<32x32xbf16, #tpu.memory_space<vmem>>, vector<32x32xbf16>
    %cst = arith.constant dense<0.000000e+00> : vector<2x32xf32>
    %5 = tpu.matmul %2, %4, %cst {dimension_numbers = #tpu.dot_dimension_numbers<[1], [0], [0], [1], [0, 0, 1, 1], [], []>} : vector<2x32xbf16>, vector<32x32xbf16>, vector<2x32xf32> -> vector<2x32xf32>
    %c0_6 = arith.constant 0 : index
    %c0_7 = arith.constant 0 : index
    %6 = vector.load %arg4[%c0_6, %c0_7] : memref<1x32xf32, #tpu.memory_space<vmem>>, vector<1x32xf32>
    %7 = vector.broadcast %6 : vector<1x32xf32> to vector<2x32xf32>
    %8 = arith.addf %5, %7 : vector<2x32xf32>
    %cst_8 = arith.constant 0.000000e+00 : f32
    %9 = vector.broadcast %cst_8 : f32 to vector<2x32xf32>
    %10 = arith.cmpf ogt, %8, %9 : vector<2x32xf32>
    %11 = math.exp %8 : vector<2x32xf32>
    %cst_9 = arith.constant 1.000000e+00 : f32
    %12 = vector.broadcast %cst_9 : f32 to vector<2x32xf32>
    %13 = arith.subf %11, %12 : vector<2x32xf32>
    %cst_10 = arith.constant 1.67326319 : f32
    %14 = vector.broadcast %cst_10 : f32 to vector<2x32xf32>
    %15 = arith.mulf %14, %13 : vector<2x32xf32>
    %16 = arith.select %10, %8, %15 : vector<2x32xi1>, vector<2x32xf32>
    %cst_11 = arith.constant 1.05070102 : f32
    %17 = vector.broadcast %cst_11 : f32 to vector<2x32xf32>
    %18 = arith.mulf %17, %16 : vector<2x32xf32>
    %19 = arith.truncf %18 : vector<2x32xf32> to vector<2x32xbf16>
    %c0_12 = arith.constant 0 : index
    %c0_13 = arith.constant 0 : index
    %20 = vector.load %arg5[%c0_12, %c0_13] : memref<32x32xbf16, #tpu.memory_space<vmem>>, vector<32x32xbf16>
    %cst_14 = arith.constant dense<0.000000e+00> : vector<2x32xf32>
    %21 = tpu.matmul %19, %20, %cst_14 {dimension_numbers = #tpu.dot_dimension_numbers<[1], [0], [0], [1], [0, 0, 1, 1], [], []>} : vector<2x32xbf16>, vector<32x32xbf16>, vector<2x32xf32> -> vector<2x32xf32>
    %c0_15 = arith.constant 0 : index
    %c0_16 = arith.constant 0 : index
    %22 = vector.load %arg6[%c0_15, %c0_16] : memref<1x32xf32, #tpu.memory_space<vmem>>, vector<1x32xf32>
    %23 = vector.broadcast %22 : vector<1x32xf32> to vector<2x32xf32>
    %24 = arith.addf %21, %23 : vector<2x32xf32>
    %cst_17 = arith.constant 0.000000e+00 : f32
    %25 = vector.broadcast %cst_17 : f32 to vector<2x32xf32>
    %26 = arith.cmpf ogt, %24, %25 : vector<2x32xf32>
    %27 = math.exp %24 : vector<2x32xf32>
    %cst_18 = arith.constant 1.000000e+00 : f32
    %28 = vector.broadcast %cst_18 : f32 to vector<2x32xf32>
    %29 = arith.subf %27, %28 : vector<2x32xf32>
    %cst_19 = arith.constant 1.67326319 : f32
    %30 = vector.broadcast %cst_19 : f32 to vector<2x32xf32>
    %31 = arith.mulf %30, %29 : vector<2x32xf32>
    %32 = arith.select %26, %24, %31 : vector<2x32xi1>, vector<2x32xf32>
    %cst_20 = arith.constant 1.05070102 : f32
    %33 = vector.broadcast %cst_20 : f32 to vector<2x32xf32>
    %34 = arith.mulf %33, %32 : vector<2x32xf32>
    %35 = arith.truncf %34 : vector<2x32xf32> to vector<2x32xbf16>
    %36 = vector.shape_cast %35 : vector<2x32xbf16> to vector<2x1x32xbf16>
    "tpu.trace_start"() <{level = 10 : i32, message = "bqh,bkh->bqk"}> : () -> ()
    %cst_21 = arith.constant dense<0.000000e+00> : vector<2x1x8xf32>
    %37 = tpu.matmul %36, %3, %cst_21 {dimension_numbers = #tpu.dot_dimension_numbers<[2], [2], [1], [1], [0, 0, 0, 1, 1, 1], [0], [0]>} : vector<2x1x32xbf16>, vector<2x8x32xbf16>, vector<2x1x8xf32> -> vector<2x1x8xf32>
    "tpu.trace_stop"() : () -> ()
    %cst_22 = arith.constant dense<0xFF800000> : vector<2x1xf32>
    %38 = vector.multi_reduction <maximumf>, %37, %cst_22 [2] : vector<2x1x8xf32> to vector<2x1xf32>
    %39 = vector.shape_cast %38 : vector<2x1xf32> to vector<2x1x1xf32>
    %40 = vector.broadcast %39 : vector<2x1x1xf32> to vector<2x1x8xf32>
    %41 = arith.subf %37, %40 : vector<2x1x8xf32>
    %42 = math.exp %41 : vector<2x1x8xf32>
    %cst_23 = arith.constant dense<0.000000e+00> : vector<2x1xf32>
    %43 = vector.multi_reduction <add>, %42, %cst_23 [2] : vector<2x1x8xf32> to vector<2x1xf32>
    %44 = vector.shape_cast %43 : vector<2x1xf32> to vector<2x1x1xf32>
    %45 = tpu.reciprocal %44 {approx = true} : vector<2x1x1xf32> -> vector<2x1x1xf32>
    %46 = vector.broadcast %45 : vector<2x1x1xf32> to vector<2x1x8xf32>
    %47 = arith.mulf %42, %46 : vector<2x1x8xf32>
    %48 = arith.truncf %47 : vector<2x1x8xf32> to vector<2x1x8xbf16>
    "tpu.trace_start"() <{level = 10 : i32, message = "bqk,bkh->bqh"}> : () -> ()
    %cst_24 = arith.constant dense<0.000000e+00> : vector<2x1x32xf32>
    %49 = tpu.matmul %48, %3, %cst_24 {dimension_numbers = #tpu.dot_dimension_numbers<[2], [1], [1], [2], [0, 0, 0, 1, 1, 2], [0], [0]>} : vector<2x1x8xbf16>, vector<2x8x32xbf16>, vector<2x1x32xf32> -> vector<2x1x32xf32>
    "tpu.trace_stop"() : () -> ()
    %50 = vector.shape_cast %49 : vector<2x1x32xf32> to vector<2x32xf32>
    %c0_25 = arith.constant 0 : index
    %c0_26 = arith.constant 0 : index
    %51 = vector.load %arg7[%c0_25, %c0_26] : memref<32x32xbf16, #tpu.memory_space<vmem>>, vector<32x32xbf16>
    %cst_27 = arith.constant dense<0.000000e+00> : vector<2x32xf32>
    %52 = tpu.matmul %2, %51, %cst_27 {dimension_numbers = #tpu.dot_dimension_numbers<[1], [0], [0], [1], [0, 0, 1, 1], [], []>} : vector<2x32xbf16>, vector<32x32xbf16>, vector<2x32xf32> -> vector<2x32xf32>
    %53 = arith.truncf %50 : vector<2x32xf32> to vector<2x32xbf16>
    %c0_28 = arith.constant 0 : index
    %c0_29 = arith.constant 0 : index
    %54 = vector.load %arg8[%c0_28, %c0_29] : memref<32x32xbf16, #tpu.memory_space<vmem>>, vector<32x32xbf16>
    %cst_30 = arith.constant dense<0.000000e+00> : vector<2x32xf32>
    %55 = tpu.matmul %53, %54, %cst_30 {dimension_numbers = #tpu.dot_dimension_numbers<[1], [0], [0], [1], [0, 0, 1, 1], [], []>} : vector<2x32xbf16>, vector<32x32xbf16>, vector<2x32xf32> -> vector<2x32xf32>
    %56 = arith.addf %52, %55 : vector<2x32xf32>
    %c0_31 = arith.constant 0 : index
    %c0_32 = arith.constant 0 : index
    %57 = vector.load %arg9[%c0_31, %c0_32] : memref<1x32xf32, #tpu.memory_space<vmem>>, vector<1x32xf32>
    %58 = vector.broadcast %57 : vector<1x32xf32> to vector<2x32xf32>
    %59 = arith.addf %56, %58 : vector<2x32xf32>
    %cst_33 = arith.constant 0.000000e+00 : f32
    %60 = vector.broadcast %cst_33 : f32 to vector<2x32xf32>
    %61 = arith.cmpf ogt, %59, %60 : vector<2x32xf32>
    %62 = math.exp %59 : vector<2x32xf32>
    %cst_34 = arith.constant 1.000000e+00 : f32
    %63 = vector.broadcast %cst_34 : f32 to vector<2x32xf32>
    %64 = arith.subf %62, %63 : vector<2x32xf32>
    %cst_35 = arith.constant 1.67326319 : f32
    %65 = vector.broadcast %cst_35 : f32 to vector<2x32xf32>
    %66 = arith.mulf %65, %64 : vector<2x32xf32>
    %67 = arith.select %61, %59, %66 : vector<2x32xi1>, vector<2x32xf32>
    %cst_36 = arith.constant 1.05070102 : f32
    %68 = vector.broadcast %cst_36 : f32 to vector<2x32xf32>
    %69 = arith.mulf %68, %67 : vector<2x32xf32>
    %70 = arith.truncf %69 : vector<2x32xf32> to vector<2x32xbf16>
    %c0_37 = arith.constant 0 : index
    %c0_38 = arith.constant 0 : index
    %71 = vector.load %arg10[%c0_37, %c0_38] : memref<32x32xbf16, #tpu.memory_space<vmem>>, vector<32x32xbf16>
    %cst_39 = arith.constant dense<0.000000e+00> : vector<2x32xf32>
    %72 = tpu.matmul %70, %71, %cst_39 {dimension_numbers = #tpu.dot_dimension_numbers<[1], [0], [0], [1], [0, 0, 1, 1], [], []>} : vector<2x32xbf16>, vector<32x32xbf16>, vector<2x32xf32> -> vector<2x32xf32>
    %c0_40 = arith.constant 0 : index
    %c0_41 = arith.constant 0 : index
    %73 = vector.load %arg11[%c0_40, %c0_41] : memref<1x32xf32, #tpu.memory_space<vmem>>, vector<1x32xf32>
    %74 = vector.broadcast %73 : vector<1x32xf32> to vector<2x32xf32>
    %75 = arith.addf %72, %74 : vector<2x32xf32>
    %cst_42 = arith.constant 0.000000e+00 : f32
    %76 = vector.broadcast %cst_42 : f32 to vector<2x32xf32>
    %77 = arith.cmpf ogt, %75, %76 : vector<2x32xf32>
    %78 = math.exp %75 : vector<2x32xf32>
    %cst_43 = arith.constant 1.000000e+00 : f32
    %79 = vector.broadcast %cst_43 : f32 to vector<2x32xf32>
    %80 = arith.subf %78, %79 : vector<2x32xf32>
    %cst_44 = arith.constant 1.67326319 : f32
    %81 = vector.broadcast %cst_44 : f32 to vector<2x32xf32>
    %82 = arith.mulf %81, %80 : vector<2x32xf32>
    %83 = arith.select %77, %75, %82 : vector<2x32xi1>, vector<2x32xf32>
    %cst_45 = arith.constant 1.05070102 : f32
    %84 = vector.broadcast %cst_45 : f32 to vector<2x32xf32>
    %85 = arith.mulf %84, %83 : vector<2x32xf32>
    %c0_46 = arith.constant 0 : index
    %c0_47 = arith.constant 0 : index
    %86 = vector.load %arg12[%c0_46, %c0_47] : memref<2x32xf32, #tpu.memory_space<vmem>>, vector<2x32xf32>
    tpu.vector_store %arg12[%c0_46, %c0_47], %85 {strides = array<i32>} : memref<2x32xf32, #tpu.memory_space<vmem>>, vector<2x32xf32>,
    %87 = vector.shape_cast %47 : vector<2x1x8xf32> to vector<2x8xf32>
    %c0_48 = arith.constant 0 : index
    %c0_49 = arith.constant 0 : index
    %88 = vector.load %arg13[%c0_48, %c0_49] : memref<2x8xf32, #tpu.memory_space<vmem>>, vector<2x8xf32>
    tpu.vector_store %arg13[%c0_48, %c0_49], %87 {strides = array<i32>} : memref<2x8xf32, #tpu.memory_space<vmem>>, vector<2x8xf32>,
    return
  }
  func.func @transform_0(%arg0: i32) -> (i32, i32) {
    %c0_i32 = arith.constant 0 : i32
    %c0_i32_0 = arith.constant 0 : i32
    %c0_i32_1 = arith.constant 0 : i32
    return %c0_i32, %c0_i32_0 : i32, i32
  }
  func.func @transform_1(%arg0: i32) -> (i32, i32, i32) {
    %c0_i32 = arith.constant 0 : i32
    %c0_i32_0 = arith.constant 0 : i32
    %c0_i32_1 = arith.constant 0 : i32
    %c0_i32_2 = arith.constant 0 : i32
    return %c0_i32, %c0_i32_0, %c0_i32_1 : i32, i32, i32
  }
  func.func @transform_2(%arg0: i32) -> (i32, i32) {
    %c0_i32 = arith.constant 0 : i32
    %c0_i32_0 = arith.constant 0 : i32
    %c0_i32_1 = arith.constant 0 : i32
    return %c0_i32, %c0_i32_0 : i32, i32
  }
  func.func @transform_3(%arg0: i32) -> (i32, i32) {
    %c0_i32 = arith.constant 0 : i32
    %c0_i32_0 = arith.constant 0 : i32
    %c0_i32_1 = arith.constant 0 : i32
    return %c0_i32, %c0_i32_0 : i32, i32
  }
  func.func @transform_4(%arg0: i32) -> (i32, i32) {
    %c0_i32 = arith.constant 0 : i32
    %c0_i32_0 = arith.constant 0 : i32
    %c0_i32_1 = arith.constant 0 : i32
    return %c0_i32, %c0_i32_0 : i32, i32
  }
  func.func @transform_5(%arg0: i32) -> (i32, i32) {
    %c0_i32 = arith.constant 0 : i32
    %c0_i32_0 = arith.constant 0 : i32
    %c0_i32_1 = arith.constant 0 : i32
    return %c0_i32, %c0_i32_0 : i32, i32
  }
  func.func @transform_6(%arg0: i32) -> (i32, i32) {
    %c0_i32 = arith.constant 0 : i32
    %c0_i32_0 = arith.constant 0 : i32
    %c0_i32_1 = arith.constant 0 : i32
    return %c0_i32, %c0_i32_0 : i32, i32
  }
  func.func @transform_7(%arg0: i32) -> (i32, i32) {
    %c0_i32 = arith.constant 0 : i32
    %c0_i32_0 = arith.constant 0 : i32
    %c0_i32_1 = arith.constant 0 : i32
    return %c0_i32, %c0_i32_0 : i32, i32
  }
  func.func @transform_8(%arg0: i32) -> (i32, i32) {
    %c0_i32 = arith.constant 0 : i32
    %c0_i32_0 = arith.constant 0 : i32
    %c0_i32_1 = arith.constant 0 : i32
    return %c0_i32, %c0_i32_0 : i32, i32
  }
  func.func @transform_9(%arg0: i32) -> (i32, i32) {
    %c0_i32 = arith.constant 0 : i32
    %c0_i32_0 = arith.constant 0 : i32
    %c0_i32_1 = arith.constant 0 : i32
    return %c0_i32, %c0_i32_0 : i32, i32
  }
  func.func @transform_10(%arg0: i32) -> (i32, i32) {
    %c0_i32 = arith.constant 0 : i32
    %c0_i32_0 = arith.constant 0 : i32
    %c0_i32_1 = arith.constant 0 : i32
    return %c0_i32, %c0_i32_0 : i32, i32
  }
  func.func @transform_11(%arg0: i32) -> (i32, i32) {
    %c0_i32 = arith.constant 0 : i32
    %c0_i32_0 = arith.constant 0 : i32
    %c0_i32_1 = arith.constant 0 : i32
    return %c0_i32, %c0_i32_0 : i32, i32
  }
  func.func @transform_12(%arg0: i32) -> (i32, i32) {
    %c0_i32 = arith.constant 0 : i32
    %c0_i32_0 = arith.constant 0 : i32
    %c0_i32_1 = arith.constant 0 : i32
    return %c0_i32, %c0_i32_0 : i32, i32
  }
}

</mosaic_0001>

<bundles_post_ra>
// kernel: tpu_custom_call.1
= control target key start
LH: loop header
LB: loop body
LE: loop exit
PB: predicated region body
PF: predicated region fallthrough
CT: control target
= control target key end

     0   :  { %18 = vsyncpa [#allocation3], 0  ;;  %s1376_s0 = inlined_call_operand.hbm [shape: f32[2,32], index: 0, kind: input, shape index: {}]   ;;  %s1377_s1 = inlined_call_operand.hbm [shape: f32[2,8,32], index: 1, kind: input, shape index: {}]   ;;  %s1378_s2 = inlined_call_operand.hbm [shape: bf16[32,32], index: 2, kind: input, shape index: {}]   ;;  %s1379_s3 = inlined_call_operand.vmem [shape: f32[1,32], index: 3, kind: input, shape index: {}]   ;;  %s1380_s4 = inlined_call_operand.hbm [shape: bf16[32,32], index: 4, kind: input, shape index: {}]   ;;  %s1381_s5 = inlined_call_operand.vmem [shape: f32[1,32], index: 5, kind: input, shape index: {}]   ;;  %s1382_s6 = inlined_call_operand.vmem [shape: bf16[32,32], index: 6, kind: input, shape index: {}]   ;;  %s1383_s7 = inlined_call_operand.hbm [shape: bf16[32,32], index: 7, kind: input, shape index: {}]   ;;  %s1384_s8 = inlined_call_operand.hbm [shape: f32[1,32], index: 8, kind: input, shape index: {}]   ;;  %s1385_s9 = inlined_call_operand.vmem [shape: bf16[32,32], index: 9, kind: input, shape index: {}]   ;;  %s1386_s10 = inlined_call_operand.vmem [shape: f32[1,32], index: 10, kind: input, shape index: {}]   ;;  %s1387_s11 = inlined_call_operand.hbm [shape: f32[2,32], index: 11, kind: output, shape index: {0}]   ;;  %s1388_s12 = inlined_call_operand.hbm [shape: f32[2,8], index: 12, kind: output, shape index: {1}]  }
   0x1   :  { %19 = vsyncpa [#allocation6], 0 }
   0x2   :  { %20 = vsyncpa [#allocation9], 0 }
   0x3   :  { %21 = vsyncpa [#allocation12], 0 }
   0x4   :  { %22 = vsyncpa [#allocation4], 0 }
   0x5   :  { %23 = vsyncpa [#allocation15], 0  ;;  %s1111_s21 = smov [#allocation5]   ;;  %s923_s25 = scalar_lea.hbm %s1377_s1, 256 }
   0x6   :  { %s39_s22 = sshll.u32 %s1111_s21, 4  ;;  %p924_p0 = scmp.ne.s32.totalorder %s1377_s1, %s923_s25  ;;  %s40_s22 = int_to_ptr.vmem [resolvable:$true] %s39_s22 }
   0x7   :  { %p927_p1 = scmp.lt.u32.totalorder %s923_s25, %s1377_s1 }
   0x9   :  { %p929_p2 = pnand %p927_p1, %p924_p0 }
   0xb   :  { %932 = shalt.err (!%p929_p2)
}
   0xc   :  { %s933_s30 = scalar_lea.vmem %s40_s22, 256  ;;  %p938_p4 = scmp.lt.s32.totalorder %s40_s22, %s40_s22 }
   0xd   :  { %p934_p3 = scmp.ne.s32.totalorder %s40_s22, %s933_s30  ;;  %p939_p5 = scmp.lt.s32.totalorder %s933_s30, %s933_s30 }
   0xf   :  { %p940_p6 = por %p939_p5, %p938_p4 }
  0x11   :  { %p941_p7 = pnand %p940_p6, %p934_p3 }
  0x13   :  { %944 = shalt.err (!%p941_p7)
}
  0x14   :  { %s1112_s13 = smov 128   ;;  %s1113_s14 = smov 8  }
  0x15   :  { %45 = dma.hbm_to_vmem [thread:$0]  %s1377_s1, 256, %s40_s22, [#allocation6], %s1112_s13, %s1112_s13, %s1113_s14  }
  0x16   :  { %s1114_s17 = smov [#allocation8]   ;;  %s1115_s19 = smov [#allocation2]  }
  0x17   :  { %s65_s18 = sshll.u32 %s1114_s17, 4  ;;  %s30_s20 = sshll.u32 %s1115_s19, 4  ;;  %s66_s18 = int_to_ptr.vmem [resolvable:$true] %s65_s18  ;;  %s31_s20 = int_to_ptr.vmem [resolvable:$true] %s30_s20 }
  0x18   :  { %s945_s24 = scalar_lea.hbm %s1380_s4, 256 }
  0x19   :  { %p946_p8 = scmp.ne.s32.totalorder %s1380_s4, %s945_s24  ;;  %p949_p9 = scmp.lt.u32.totalorder %s945_s24, %s1380_s4 }
  0x1b   :  { %p951_p10 = pnand %p949_p9, %p946_p8 }
  0x1d   :  { %954 = shalt.err (!%p951_p10)
}
  0x1e   :  { %s955_s1 = scalar_lea.vmem %s66_s18, 256  ;;  %p960_p12 = scmp.lt.s32.totalorder %s66_s18, %s66_s18 }
  0x1f   :  { %p956_p11 = scmp.ne.s32.totalorder %s66_s18, %s955_s1  ;;  %p961_p13 = scmp.lt.s32.totalorder %s955_s1, %s955_s1 }
  0x21   :  { %p962_p0 = por %p961_p13, %p960_p12 }
  0x23   :  { %p963_p1 = pnand %p962_p0, %p956_p11 }
  0x25   :  { %966 = shalt.err (!%p963_p1)
}
  0x26   :  { %s1116_s22 = smov 64   ;;  %s1117_s29 = smov 4  }
  0x27   :  { %71 = dma.hbm_to_vmem [thread:$0]  %s1380_s4, 256, %s66_s18, [#allocation9], %s1116_s22, %s1116_s22, %s1117_s29  }
  0x28   :  { %s967_s16 = scalar_lea.hbm %s1376_s0, 32 }
  0x29   :  { %p968_p2 = scmp.ne.s32.totalorder %s1376_s0, %s967_s16  ;;  %p971_p3 = scmp.lt.u32.totalorder %s967_s16, %s1376_s0 }
  0x2b   :  { %p973_p4 = pnand %p971_p3, %p968_p2 }
  0x2d   :  { %976 = shalt.err (!%p973_p4)
}
  0x2e   :  { %s977_s24 = scalar_lea.vmem %s31_s20, 32  ;;  %p982_p6 = scmp.lt.s32.totalorder %s31_s20, %s31_s20 }
  0x2f   :  { %p978_p5 = scmp.ne.s32.totalorder %s31_s20, %s977_s24  ;;  %p983_p7 = scmp.lt.s32.totalorder %s977_s24, %s977_s24 }
  0x31   :  { %p984_p8 = por %p983_p7, %p982_p6 }
  0x33   :  { %p985_p9 = pnand %p984_p8, %p978_p5 }
  0x35   :  { %988 = shalt.err (!%p985_p9)
}
  0x36   :  { %33 = dma.hbm_to_vmem [thread:$0]  %s1376_s0, 32, %s31_s20, [#allocation3]  }
  0x37   :  { %s1118_s25 = smov [#allocation7]   ;;  %s1119_s27 = smov [#allocation10]  }
  0x38   :  { %s51_s26 = sshll.u32 %s1118_s25, 4  ;;  %s81_s28 = sshll.u32 %s1119_s27, 4  ;;  %s52_s26 = int_to_ptr.vmem [resolvable:$true] %s51_s26  ;;  %s82_s28 = int_to_ptr.vmem [resolvable:$true] %s81_s28 }
  0x39   :  { %s989_s13 = scalar_lea.hbm %s1378_s2, 256 }
  0x3a   :  { %p990_p10 = scmp.ne.s32.totalorder %s1378_s2, %s989_s13  ;;  %p993_p11 = scmp.lt.u32.totalorder %s989_s13, %s1378_s2 }
  0x3c   :  { %p995_p12 = pnand %p993_p11, %p990_p10 }
  0x3e   :  { %998 = shalt.err (!%p995_p12)
}
  0x3f   :  { %s999_s0 = scalar_lea.vmem %s52_s26, 256  ;;  %p1004_p0 = scmp.lt.s32.totalorder %s52_s26, %s52_s26 }
  0x40   :  { %p1000_p13 = scmp.ne.s32.totalorder %s52_s26, %s999_s0  ;;  %p1005_p1 = scmp.lt.s32.totalorder %s999_s0, %s999_s0 }
  0x42   :  { %p1006_p2 = por %p1005_p1, %p1004_p0 }
  0x44   :  { %p1007_p3 = pnand %p1006_p2, %p1000_p13 }
  0x46   :  { %1010 = shalt.err (!%p1007_p3)
}
  0x47   :  { %57 = dma.hbm_to_vmem [thread:$0]  %s1378_s2, 256, %s52_s26, [#allocation6], %s1116_s22, %s1116_s22, %s1117_s29  }
  0x48   :  { %s1011_s24 = scalar_lea.hbm %s1383_s7, 256 }
  0x49   :  { %p1012_p4 = scmp.ne.s32.totalorder %s1383_s7, %s1011_s24  ;;  %p1015_p5 = scmp.lt.u32.totalorder %s1011_s24, %s1383_s7 }
  0x4b   :  { %p1017_p6 = pnand %p1015_p5, %p1012_p4 }
  0x4d   :  { %1020 = shalt.err (!%p1017_p6)
}
  0x4e   :  { %s1021_s1 = scalar_lea.vmem %s82_s28, 256  ;;  %p1026_p8 = scmp.lt.s32.totalorder %s82_s28, %s82_s28 }
  0x4f   :  { %p1022_p7 = scmp.ne.s32.totalorder %s82_s28, %s1021_s1  ;;  %p1027_p9 = scmp.lt.s32.totalorder %s1021_s1, %s1021_s1 }
  0x51   :  { %p1028_p10 = por %p1027_p9, %p1026_p8 }
  0x53   :  { %p1029_p11 = pnand %p1028_p10, %p1022_p7 }
  0x55   :  { %1032 = shalt.err (!%p1029_p11)
}
  0x56   :  { %87 = dma.hbm_to_vmem [thread:$0]  %s1383_s7, 256, %s82_s28, [#allocation9], %s1116_s22, %s1116_s22, %s1117_s29  }
  0x57   :  { %s1120_s30 = smov [#allocation11]   ;;  %s1033_s16 = scalar_lea.hbm %s1384_s8, 16 }
  0x58   :  { %s94_s13 = sshll.u32 %s1120_s30, 4  ;;  %p1034_p12 = scmp.ne.s32.totalorder %s1384_s8, %s1033_s16  ;;  %s95_s13 = int_to_ptr.vmem [resolvable:$true] %s94_s13 }
  0x59   :  { %p1037_p13 = scmp.lt.u32.totalorder %s1033_s16, %s1384_s8 }
  0x5b   :  { %p1039_p0 = pnand %p1037_p13, %p1034_p12 }
  0x5d   :  { %1042 = shalt.err (!%p1039_p0)
}
  0x5e   :  { %s1043_s21 = scalar_lea.vmem %s95_s13, 16  ;;  %s1047_s7 = scalar_lea.vmem %s95_s13, 32 }
  0x5f   :  { %p1044_p1 = scmp.ne.s32.totalorder %s95_s13, %s1043_s21  ;;  %p1048_p2 = scmp.lt.s32.totalorder %s95_s13, %s95_s13 }
  0x60   :  { %p1049_p3 = scmp.lt.s32.totalorder %s1047_s7, %s1043_s21 }
  0x62   :  { %p1050_p4 = por %p1049_p3, %p1048_p2 }
  0x64   :  { %p1051_p5 = pnand %p1050_p4, %p1044_p1 }
  0x66   :  { %1054 = shalt.err (!%p1051_p5)
}
  0x67   :  { %97 = dma.hbm_to_vmem [thread:$0]  %s1384_s8, 16, %s95_s13, [#allocation12]  }
  0x68   :  { %1099 = dma.done.wait [#allocation3], 32  }
  0x69   :  { %1100 = vsyncadd [#allocation3], 4294967264 }
  0x6a   :  { %1101 = dma.done.wait [#allocation6], 512  }
  0x6b   :  { %1102 = vsyncadd [#allocation6], 4294966784 }
  0x6c   :  { %1103 = dma.done.wait [#allocation9], 512  }
  0x6d   :  { %1104 = vsyncadd [#allocation9], 4294966784 }
  0x6e   :  { %1105 = dma.done.wait [#allocation12], 16  }
  0x6f   :  { %1106 = vsyncadd [#allocation12], 4294967280  ;;  %v1121_v0 = vmov 0.0   ;;  %vm1122_vm0 = vmmov 0   ;;  %v897_v1 = vld [vmem:[#allocation7] sm:$0xff]   ;;  %v898_v2 = vld [vmem:[#allocation7 + $0x8] sm:$0xff]   ;;  %v280_v35 = vlaneseq }
  0x70   :  { %818 = vmatprep.subr.bf16.mxu0 %v1121_v0  ;;  %822 = vmatprep.mubr.msk.bf16.mxu0 %vm1122_vm0, %v1121_v0  ;;  %v121_v3 = vld [vmem:[#allocation2] sm:$0x3]  ;;  %vm150_vm1 = vcmask 261120   ;;  %v899_v5 = vld [vmem:[#allocation8] sm:$0xff]   ;;  %v900_v6 = vld [vmem:[#allocation8 + $0x8] sm:$0xff]   ;;  %vm395_vm4 = vcmask 57344  }
  0x71   :  { %826 = vmatprep.subr.bf16.mxu1 %v1121_v0  ;;  %830 = vmatprep.mubr.msk.bf16.mxu1 %vm1122_vm0, %v1121_v0  ;;  %v1279_v4 = vpack.c.bf16 %v121_v3, %v121_v3  ;;  %v767_v7 = vld [vmem:[%s1379_s3] ss:$0 sm:$0xff]  ;;  %v122_v20 = vld [vmem:[#allocation5] sm:$0xff]  ;;  %v123_v22 = vld [vmem:[#allocation5 + $0x8] sm:$0xff]  ;;  %v1123_v33 = vmov 1966171168  }
  0x72   :  { %819 = vmatpush3.bf16.msra.mxu0 %v897_v1  ;;  %827 = vmatpush3.bf16.msra.mxu1 %v899_v5  ;;  %v1294_v21 = vpack.c.bf16 %v122_v20, %v122_v20  ;;  %v1298_v24 = vpack.c.bf16 %v123_v22, %v123_v22  ;;  %v772_v26 = vld [vmem:[%s1381_s5] ss:$0 sm:$0xff]  ;;  %v278_v34 = vunpack.c.l.s4 %v1123_v33  ;;  %v281_v39 = vshrl.u32 %v280_v35, 7 }
  0x73   :  { %820 = vmatprep.subr.bf16.mxu0 %v1121_v0  ;;  %828 = vmatprep.subr.bf16.mxu1 %v1121_v0  ;;  %vm424_vm5 = vcmask 1043456   ;;  %vm420_vm6 = vcmask 64512   ;;  %vm527_vm7 = vcmask 1041409   ;;  %vm733_vm8 = vcmask 58368  }
  0x74   :  { %v302_v23 = vsel %vm150_vm1, %v1294_v21, 0  ;;  %v353_v25 = vsel %vm150_vm1, %v1298_v24, 0  ;;  %v279_v38 = vunpack.c.0.s8 %v278_v34  ;;  %v296_v47 = vsub.s32 0, %v281_v39 }
  0x76   :  { %821 = vmatpush3.bf16.msra.mxu0 %v898_v2  ;;  %829 = vmatpush3.bf16.msra.mxu1 %v900_v6  ;;  %v282_v43 = vsub.s32 %v279_v38, %v281_v39 }
  0x77   :  { %834 = vmatprep.subr.bf16.mxu0 %v1121_v0  ;;  %840 = vmatprep.subr.bf16.mxu1 %v1121_v0 }
  0x79   :  { %823 = vmatmul.mubr.msk.bf16.vlgmr.msra.gmra.mrb[0].mxu0 %vm150_vm1, %v1279_v4 }
  0x7a   :  { %836 = vmatprep.mubr.msk.bf16.mxu0 %vm1122_vm0, %v1121_v0 }
  0x7f   :  { %835 = vmatpush3.bf16.xpose.msra.mxu0 %v302_v23  ;;  %v901_v23 = vld [vmem:[%s1382_s6] sm:$0xff]  }
  0x80   :  { %846 = vmatprep.subr.bf16.mxu0 %v1121_v0 }
 0x14c   :  { %v188_v8 = vpop.f32.mrb[0].mxu0 }
 0x14d   :  { %v189_v9 = vadd.f32 %v767_v7, %v188_v8  ;;  %v824_v10 = vpop.f32.mrb[1].mxu0 }
 0x14e   :  { %v191_v11 = vpop.f32.mrb[2].mxu0 }
 0x14f   :  { %v195_v12 = vmul.f32 1.442695, %v189_v9  ;;  %v825_v13 = vpop.f32.mrb[3].mxu0  ;;  %vm194_vm2 = vcmp.gt.f32.partialorder %v189_v9, 0.0  ;;  %v470_v11 = vsel %vm424_vm5, %v1298_v24, 0  ;;  %v902_v24 = vld [vmem:[#allocation10] sm:$0xff]  }
 0x151   :  { %907 = vpow2.f32 %v195_v12  ;;  %v425_v12 = vsel %vm424_vm5, %v1294_v21, 0 }
 0x15b   :  { %v908_v14 = vpop.eup %907 }
 0x15c   :  { %v771_v15 = vadd.f32 -1.0, %v908_v14 }
 0x15e   :  { %v198_v16 = vmul.f32 1.6732632, %v771_v15 }
 0x160   :  { %v199_v17 = vsel %vm194_vm2, %v189_v9, %v198_v16 }
 0x161   :  { %v200_v18 = vmul.f32 1.050701, %v199_v17 }
 0x163   :  { %v201_v19 = vpack.c.bf16 %v200_v18, %v200_v18 }
 0x165   :  { %831 = vmatmul.mubr.msk.bf16.vlgmr.msra.gmra.mrb[0].mxu1 %vm150_vm1, %v201_v19 }
 0x166   :  { %842 = vmatprep.mubr.msk.bf16.mxu1 %vm1122_vm0, %v1121_v0  ;;  %841 = vmatpush3.bf16.xpose.msra.mxu1 %v353_v25  ;;  %v903_v25 = vld [vmem:[%s1382_s6 + $0x8] sm:$0xff]  }
 0x167   :  { %852 = vmatprep.subr.bf16.mxu1 %v1121_v0 }
 0x238   :  { %v262_v27 = vpop.f32.mrb[0].mxu1 }
 0x239   :  { %v263_v28 = vadd.f32 %v772_v26, %v262_v27  ;;  %v832_v29 = vpop.f32.mrb[1].mxu1  ;;  %v904_v26 = vld [vmem:[#allocation10 + $0x8] sm:$0xff]  }
 0x23a   :  { %v265_v30 = vpop.f32.mrb[2].mxu1 }
 0x23b   :  { %v269_v31 = vmul.f32 1.442695, %v263_v28  ;;  %v833_v32 = vpop.f32.mrb[3].mxu1  ;;  %vm268_vm3 = vcmp.gt.f32.partialorder %v263_v28, 0.0 }
 0x23d   :  { %909 = vpow2.f32 %v269_v31 }
 0x247   :  { %v910_v36 = vpop.eup %909 }
 0x248   :  { %v776_v37 = vadd.f32 -1.0, %v910_v36 }
 0x24a   :  { %v272_v40 = vmul.f32 1.6732632, %v776_v37 }
 0x24c   :  { %v273_v41 = vsel %vm268_vm3, %v263_v28, %v272_v40 }
 0x24d   :  { %v274_v42 = vmul.f32 1.050701, %v273_v41 }
 0x24f   :  { %v275_v44 = vpack.c.bf16 %v274_v42, %v274_v42 }
 0x251   :  { %v283_v45 = vrot.slane %v275_v44, %v282_v43 }
 0x253   :  { %v290_v46 = vrot.slane %v283_v45, %v282_v43  ;;  %v905_v45 = vld [vmem:[%s1385_s9] sm:$0xff]  }
 0x255   :  { %v292_v48 = vunpack.i.h.s16 %v290_v46  ;;  %v777_v49 = vpack.i.b16 %v290_v46, %v290_v46  ;;  %v906_v46 = vld [vmem:[%s1385_s9 + $0x8] sm:$0xff]   ;;  %s1124_s9 = smov [#allocation14]  }
 0x256   :  { %s751_s2 = sshll.u32 %s1124_s9, 4  ;;  %s752_s2 = int_to_ptr.vmem [resolvable:$true] %s751_s2 }
 0x257   :  { %v344_v50 = vpack.i.b16 %v292_v48, %v292_v48  ;;  %v297_v51 = vrot.slane %v777_v49, %v296_v47  ;;  %v788_v48 = vld [vmem:[#allocation11] ss:$0 sm:$0xff]  ;;  %s1055_s26 = scalar_lea.vmem %s752_s2, 32  ;;  %p1060_p7 = scmp.lt.s32.totalorder %s752_s2, %s752_s2 }
 0x258   :  { %p1056_p6 = scmp.ne.s32.totalorder %s752_s2, %s1055_s26  ;;  %p1061_p8 = scmp.lt.s32.totalorder %s1055_s26, %s1055_s26 }
 0x259   :  { %837 = vmatmul.mubr.msk.bf16.vlgmr.msra.gmra.mrb[4].mxu0 %vm150_vm1, %v297_v51  ;;  %v348_v52 = vrot.slane %v344_v50, %v296_v47 }
 0x25a   :  { %848 = vmatprep.mubr.msk.bf16.mxu0 %vm1122_vm0, %v1121_v0  ;;  %847 = vmatpush3.bf16.msra.mxu0 %v425_v12  ;;  %p1062_p9 = por %p1061_p8, %p1060_p7 }
 0x25b   :  { %843 = vmatmul.mubr.msk.bf16.vlgmr.msra.gmra.mrb[4].mxu1 %vm150_vm1, %v348_v52  ;;  %858 = vmatprep.subr.bf16.mxu0 %v1121_v0 }
 0x25c   :  { %854 = vmatprep.mubr.msk.bf16.mxu1 %vm1122_vm0, %v1121_v0  ;;  %853 = vmatpush3.bf16.msra.mxu1 %v470_v11  ;;  %p1063_p10 = pnand %p1062_p9, %p1056_p6 }
 0x25d   :  { %866 = vmatprep.subr.bf16.mxu1 %v1121_v0 }
 0x32c   :  { %v338_v53 = vpop.f32.mrb[4].mxu0 }
 0x32d   :  { %v838_v54 = vpop.f32.mrb[5].mxu0  ;;  %v396_v62 = vsel %vm395_vm4, %v338_v53, -inf }
 0x32e   :  { %v341_v55 = vpop.f32.mrb[6].mxu0  ;;  %v389_v56 = vpop.f32.mrb[4].mxu1 }
 0x32f   :  { %v839_v57 = vpop.f32.mrb[7].mxu0  ;;  %v844_v58 = vpop.f32.mrb[5].mxu1  ;;  %v399_v59 = vsel %vm395_vm4, %v389_v56, -inf }
 0x330   :  { %400 = vmax.xlane.f32.xlu0 %v399_v59  ;;  %v392_v60 = vpop.f32.mrb[6].mxu1 }
 0x331   :  { %v845_v61 = vpop.f32.mrb[7].mxu1 }
 0x334   :  { %397 = vmax.xlane.f32.xlu0 %v396_v62 }
 0x3bd   :  { %v401_v63 = vpop.xlane.xlu0 %400 }
 0x3be   :  { %v403_v1 = vsub.f32 %v389_v56, %v401_v63 }
 0x3c0   :  { %v406_v2 = vmul.f32 1.442695, %v403_v1 }
 0x3c1   :  { %v398_v3 = vpop.xlane.xlu0 %397 }
 0x3c2   :  { %911 = vpow2.f32 %v406_v2  ;;  %v402_v5 = vsub.f32 %v338_v53, %v398_v3 }
 0x3c4   :  { %v404_v6 = vmul.f32 1.442695, %v402_v5 }
 0x3c6   :  { %913 = vpow2.f32 %v404_v6 }
 0x3cc   :  { %v912_v7 = vpop.eup %911 }
 0x3cd   :  { %v411_v8 = vsel %vm395_vm4, %v912_v7, 0.0 }
 0x3ce   :  { %412 = vadd.xlane.f32.xlu1 %v411_v8 }
 0x3d0   :  { %v914_v9 = vpop.eup %913 }
 0x3d1   :  { %v408_v10 = vsel %vm395_vm4, %v914_v9, 0.0 }
 0x3d2   :  { %409 = vadd.xlane.f32.xlu1 %v408_v10 }
 0x45b   :  { %v413_v13 = vpop.xlane.xlu1 %412 }
 0x45c   :  { %915 = vrcp.f32 %v413_v13 }
 0x45f   :  { %v410_v14 = vpop.xlane.xlu1 %409 }
 0x460   :  { %917 = vrcp.f32 %v410_v14 }
 0x466   :  { %v916_v15 = vpop.eup %915 }
 0x467   :  { %v417_v16 = vmul.f32 %v916_v15, %v912_v7 }
 0x469   :  { %v419_v17 = vpack.c.bf16 %v417_v16, %v417_v16  ;;  %v730_v20 = vrot.slane %v417_v16, 7 }
 0x46a   :  { %v918_v18 = vpop.eup %917 }
 0x46b   :  { %v416_v19 = vmul.f32 %v918_v18, %v914_v9  ;;  %855 = vmatmul.mubr.msk.bf16.vlgmr.msra.gmra.mrb[8].mxu1 %vm420_vm6, %v419_v17 }
 0x46c   :  { %870 = vmatprep.mubr.msk.bf16.mxu1 %vm1122_vm0, %v1121_v0  ;;  %867 = vmatpush3.bf16.msra.mxu1 %v901_v23 }
 0x46d   :  { %v418_v21 = vpack.c.bf16 %v416_v19, %v416_v19  ;;  %v731_v22 = vsel %vm527_vm7, %v730_v20, %v416_v19  ;;  %868 = vmatprep.subr.bf16.mxu1 %v1121_v0 }
 0x46e   :  { %734 = vst.msk [vmem:[#allocation14] sm:$0x3] %vm733_vm8, %v731_v22 }
 0x46f   :  { %849 = vmatmul.mubr.msk.bf16.vlgmr.msra.gmra.mrb[8].mxu0 %vm420_vm6, %v418_v21 }
 0x470   :  { %862 = vmatprep.mubr.msk.bf16.mxu0 %vm1122_vm0, %v1121_v0  ;;  %859 = vmatpush3.bf16.msra.mxu0 %v902_v24 }
 0x471   :  { %869 = vmatpush3.bf16.msra.mxu1 %v903_v25  ;;  %860 = vmatprep.subr.bf16.mxu0 %v1121_v0 }
 0x474   :  { %861 = vmatpush3.bf16.msra.mxu0 %v904_v26  ;;  %871 = vmatmul.mubr.msk.bf16.vlgmr.msra.gmra.mrb[12].mxu1 %vm150_vm1, %v1279_v4 }
 0x475   :  { %874 = vmatprep.subr.bf16.mxu0 %v1121_v0 }
 0x53e   :  { %v506_v27 = vpop.f32.mrb[8].mxu1 }
 0x53f   :  { %v517_v28 = vpack.c.bf16 %v506_v27, %v506_v27  ;;  %v856_v29 = vpop.f32.mrb[9].mxu1 }
 0x540   :  { %v509_v30 = vpop.f32.mrb[10].mxu1 }
 0x541   :  { %v525_v31 = vunpack.c.l.b16 %v517_v28  ;;  %v857_v32 = vpop.f32.mrb[11].mxu1 }
 0x542   :  { %v461_v33 = vpop.f32.mrb[8].mxu0 }
 0x543   :  { %v516_v34 = vpack.c.bf16 %v461_v33, %v461_v33  ;;  %v850_v35 = vpop.f32.mrb[9].mxu0  ;;  %v526_v37 = vrot.slane %v525_v31, 7 }
 0x544   :  { %v464_v36 = vpop.f32.mrb[10].mxu0 }
 0x545   :  { %v524_v38 = vunpack.c.l.b16 %v516_v34  ;;  %v851_v39 = vpop.f32.mrb[11].mxu0 }
 0x547   :  { %v528_v40 = vsel %vm527_vm7, %v526_v37, %v524_v38  ;;  %v631_v4 = vpop.f32.mrb[12].mxu1 }
 0x548   :  { %v529_v41 = vpack.c.b16 %v528_v40, %v528_v40  ;;  %v872_v42 = vpop.f32.mrb[13].mxu1 }
 0x549   :  { %v634_v43 = vpop.f32.mrb[14].mxu1 }
 0x54a   :  { %863 = vmatmul.mubr.msk.bf16.vlgmr.msra.gmra.mrb[12].mxu0 %vm150_vm1, %v529_v41  ;;  %v873_v44 = vpop.f32.mrb[15].mxu1 }
 0x54b   :  { %878 = vmatprep.mubr.msk.bf16.mxu0 %vm1122_vm0, %v1121_v0  ;;  %875 = vmatpush3.bf16.msra.mxu0 %v905_v45 }
 0x54c   :  { %876 = vmatprep.subr.bf16.mxu0 %v1121_v0 }
 0x54f   :  { %877 = vmatpush3.bf16.msra.mxu0 %v906_v46 }
 0x61d   :  { %v579_v47 = vpop.f32.mrb[12].mxu0 }
 0x61e   :  { %v632_v49 = vadd.f32 %v631_v4, %v579_v47  ;;  %v864_v50 = vpop.f32.mrb[13].mxu0 }
 0x61f   :  { %v582_v51 = vpop.f32.mrb[14].mxu0 }
 0x620   :  { %v644_v52 = vadd.f32 %v788_v48, %v632_v49  ;;  %v865_v53 = vpop.f32.mrb[15].mxu0 }
 0x622   :  { %v646_v54 = vmul.f32 1.442695, %v644_v52  ;;  %vm645_vm9 = vcmp.gt.f32.partialorder %v644_v52, 0.0 }
 0x624   :  { %919 = vpow2.f32 %v646_v54 }
 0x62e   :  { %v920_v55 = vpop.eup %919 }
 0x62f   :  { %v789_v56 = vadd.f32 -1.0, %v920_v55 }
 0x631   :  { %v649_v57 = vmul.f32 1.6732632, %v789_v56 }
 0x633   :  { %v650_v58 = vsel %vm645_vm9, %v644_v52, %v649_v57 }
 0x634   :  { %v651_v0 = vmul.f32 1.050701, %v650_v58 }
 0x636   :  { %v652_v59 = vpack.c.bf16 %v651_v0, %v651_v0 }
 0x638   :  { %879 = vmatmul.mubr.msk.bf16.vlgmr.msra.gmra.mrb[16].mxu0 %vm150_vm1, %v652_v59 }
 0x639   :  { %1066 = shalt.err (!%p1063_p10)
}
 0x63a   :  { %s1067_s14 = scalar_lea.hbm %s1388_s12, 32 }
 0x63b   :  { %p1068_p11 = scmp.ne.s32.totalorder %s1388_s12, %s1067_s14  ;;  %p1071_p12 = scmp.lt.u32.totalorder %s1067_s14, %s1388_s12 }
 0x63d   :  { %p1073_p13 = pnand %p1071_p12, %p1068_p11 }
 0x63f   :  { %1076 = shalt.err (!%p1073_p13)
}
 0x640   :  { %754 = dma.vmem_to_hbm [thread:$0]  %s752_s2, 32, %s1388_s12, [#allocation15]   ;;  %v790_v60 = vld [vmem:[%s1386_s10] ss:$0 sm:$0xff]  ;;  %vm726_vm11 = vcmask 254976  }
 0x641   :  { %s1125_s22 = smov [#allocation13]  }
 0x642   :  { %s741_s29 = sshll.u32 %s1125_s22, 4  ;;  %s742_s29 = int_to_ptr.vmem [resolvable:$true] %s741_s29 }
 0x643   :  { %s1077_s12 = scalar_lea.vmem %s742_s29, 32  ;;  %p1082_p1 = scmp.lt.s32.totalorder %s742_s29, %s742_s29 }
 0x644   :  { %p1078_p0 = scmp.ne.s32.totalorder %s742_s29, %s1077_s12  ;;  %p1083_p2 = scmp.lt.s32.totalorder %s1077_s12, %s1077_s12 }
 0x646   :  { %p1084_p3 = por %p1083_p2, %p1082_p1 }
 0x648   :  { %p1085_p4 = pnand %p1084_p3, %p1078_p0 }
 0x70b   :  { %v713_v61 = vpop.f32.mrb[16].mxu0 }
 0x70c   :  { %v714_v62 = vadd.f32 %v790_v60, %v713_v61  ;;  %v880_v63 = vpop.f32.mrb[17].mxu0 }
 0x70d   :  { %v716_v1 = vpop.f32.mrb[18].mxu0 }
 0x70e   :  { %v720_v2 = vmul.f32 1.442695, %v714_v62  ;;  %v881_v3 = vpop.f32.mrb[19].mxu0  ;;  %vm719_vm10 = vcmp.gt.f32.partialorder %v714_v62, 0.0 }
 0x710   :  { %921 = vpow2.f32 %v720_v2 }
 0x71a   :  { %v922_v5 = vpop.eup %921 }
 0x71b   :  { %v794_v6 = vadd.f32 -1.0, %v922_v5 }
 0x71d   :  { %v723_v7 = vmul.f32 1.6732632, %v794_v6 }
 0x71f   :  { %v724_v8 = vsel %vm719_vm10, %v714_v62, %v723_v7 }
 0x720   :  { %v725_v9 = vmul.f32 1.050701, %v724_v8 }
 0x722   :  { %727 = vst.msk [vmem:[#allocation13] sm:$0x3] %vm726_vm11, %v725_v9 }
 0x723   :  { %1088 = shalt.err (!%p1085_p4)
}
 0x724   :  { %s1089_s28 = scalar_lea.hbm %s1387_s11, 32 }
 0x725   :  { %p1090_p5 = scmp.ne.s32.totalorder %s1387_s11, %s1089_s28  ;;  %p1093_p6 = scmp.lt.u32.totalorder %s1089_s28, %s1387_s11 }
 0x727   :  { %p1095_p7 = pnand %p1093_p6, %p1090_p5 }
 0x729   :  { %1098 = shalt.err (!%p1095_p7)
}
 0x72a   :  { %744 = dma.vmem_to_hbm [thread:$0]  %s742_s29, 32, %s1387_s11, [#allocation4]  }
 0x72b   :  { %1107 = dma.done.wait [#allocation4], 32  }
 0x72c   :  { %1108 = vsyncadd [#allocation4], 4294967264 }
 0x72d   :  { %1109 = dma.done.wait [#allocation15], 32  }
 0x72e   :  { %1110 = vsyncadd [#allocation15], 4294967264 }
 0x72f   :  { %761 = vsyncpa [#allocation3], 1 }
 0x730   :  { %762 = vsyncpa [#allocation6], 1 }
 0x731   :  { %763 = vsyncpa [#allocation9], 1 }
 0x732   :  { %764 = vsyncpa [#allocation12], 1 }
 0x733   :  { %765 = vsyncpa [#allocation4], 1 }
 0x734   :  { %766 = vsyncpa [#allocation15], 1 }

</bundles_post_ra>
